<compile_context>
chip_gen: v7x
topology: tpu7x:2x2x1
jax: 0.10.0
libtpu: 0.0.40
codegen_flags: <defaults>
</compile_context>

<pallas_src>
import functools

import jax
import jax.numpy as jnp
from jax.experimental import pallas as pl
from jax.experimental.pallas import tpu as pltpu


_GROUP_ROWS = 64  # multiple of the sublane packing for f32 (8), bf16 (16), int8 (32)


def _round_up(x, m):
    return ((x + m - 1) // m) * m


def _guess_num_tensorcores():
    """Best-effort detection of TensorCores per device (v7x has 2)."""
    try:
        info = pltpu.get_tpu_info()
        for name in ("num_cores", "core_count", "num_tensorcores", "tensorcore_count"):
            v = getattr(info, name, None)
            if v:
                return int(v)
    except Exception:
        pass
    try:
        dev = jax.devices()[0]
        for name in ("num_cores", "core_count"):
            v = getattr(dev, name, None)
            if v:
                return int(v)
        if "v7" in str(getattr(dev, "device_kind", "")).lower():
            return 2
    except Exception:
        pass
    return 1


def _deep_energy_kernel(pt_ref, pf_ref, out_ref, acc_sq, acc_diff, *,
                        alpha, inv_n, group_rows, rows_valid, needs_mask):
    """Grid = (num_parts, blocks_per_part); axis 1 is the reduction axis."""
    p = pl.program_id(0)
    k = pl.program_id(1)
    nk = pl.num_programs(1)
    g = p * nk + k                       # global (unclamped) block index

    @pl.when(k == 0)
    def _init():
        acc_sq[...] = jnp.zeros_like(acc_sq)
        acc_diff[...] = jnp.zeros_like(acc_diff)

    tile_rows, cols = pt_ref.shape
    num_groups = tile_rows // group_rows

    if needs_mask:
        # Hoisted once per grid step; reused by every row group below.
        row_iota = jax.lax.broadcasted_iota(jnp.int32, (group_rows, cols), 0)
        rows_left = rows_valid - g * tile_rows   # valid rows inside this block

    def accumulate(r0):
        g_pt = pt_ref[pl.ds(r0, group_rows), :].astype(jnp.float32)
        g_pf = pf_ref[pl.ds(r0, group_rows), :].astype(jnp.float32)
        if needs_mask:
            valid = (row_iota + r0) < rows_left
            g_pt = jnp.where(valid, g_pt, 0.0)   # select, never multiply garbage
            g_pf = jnp.where(valid, g_pf, 0.0)
        acc_sq[...] += g_pt * g_pt + g_pf * g_pf
        acc_diff[...] += g_pf - g_pt

    if num_groups == 1:
        accumulate(0)
    else:
        def body(it, carry):
            accumulate(pl.multiple_of(it * group_rows, group_rows))
            return carry
        jax.lax.fori_loop(0, num_groups, body, 0, unroll=2)

    @pl.when(k == nk - 1)
    def _finalize():
        total_sq = jnp.sum(acc_sq[...])
        total_diff = jnp.sum(acc_diff[...])
        reg = (alpha * inv_n) * total_sq
        div = inv_n * total_diff
        lane = jax.lax.broadcasted_iota(jnp.int32, out_ref.shape, 2)
        out_ref[...] = jnp.where(lane == 0, reg,
                                 jnp.where(lane == 1, div, 0.0)).astype(out_ref.dtype)


def _reference_jnp(pred_true, pred_false, alpha=1.0, reduction=True):
    pt = pred_true.astype(jnp.float32)
    pf = pred_false.astype(jnp.float32)
    loss_reg = alpha * jnp.mean(pt * pt + pf * pf)
    loss_div = jnp.mean(pf) - jnp.mean(pt)
    if reduction:
        return loss_reg + loss_div
    return loss_reg, loss_div


def deep_energy_loss(pred_true, pred_false, *, alpha=1.0, reduction=True,
                     target_block_bytes=4 << 20, max_block_rows=8192,
                     min_pallas_elems=1 << 16, num_parts=None,
                     force_pallas=False):
    assert pred_true.shape == pred_false.shape, "shape mismatch"
    assert pred_true.dtype == pred_false.dtype, "dtype mismatch"
    n_total = int(pred_true.size)
    assert n_total > 0

    # Tiny inputs: launch + grid overhead dwarfs the 2 reads / ~3 flops per element.
    if not force_pallas and n_total < min_pallas_elems:
        return _reference_jnp(pred_true, pred_false, alpha, reduction)

    itemsize = jnp.dtype(pred_true.dtype).itemsize

    # Lane width: largest multiple of 128 dividing numel -> free reshape, no
    # extra HBM pass.  Only when nothing divides do we fall back to a zero pad
    # (zeros add nothing to either sum; we divide by the true element count).
    C = None
    for c in (512, 384, 256, 128):
        if n_total % c == 0:
            C = c
            break

    pt = pred_true.reshape(-1)
    pf = pred_false.reshape(-1)
    if C is None:
        C = 512
        padded_n = _round_up(n_total, C)
        pad = padded_n - n_total
        pt = jnp.pad(pt, (0, pad))   # slow path: only for numel not divisible by 128
        pf = jnp.pad(pf, (0, pad))
        rows = padded_n // C
    else:
        rows = n_total // C
    pt = pt.reshape(rows, C)
    pf = pf.reshape(rows, C)

    # --- block sizing --------------------------------------------------------
    # ~4 MiB per input per step; with the 64-row streaming inner loop there are
    # no full-tile f32 temporaries, so 2 inputs x 2 pipeline buffers fit easily.
    target_rows = max(1, min(int(max_block_rows),
                             int(target_block_bytes) // (C * itemsize)))
    sub = {1: 32, 2: 16}.get(itemsize, 8)      # dtype-dependent sublane multiple
    if rows < _GROUP_ROWS:
        tile_rows = rows                        # single full-extent block
        group_rows = rows
    else:
        tr = min(target_rows, rows)
        if tr >= _GROUP_ROWS:
            tile_rows = (tr // _GROUP_ROWS) * _GROUP_ROWS
            group_rows = _GROUP_ROWS
        else:                                   # user forced very small blocks
            tile_rows = max(sub, (tr // sub) * sub)
            group_rows = tile_rows
    assert tile_rows % group_rows == 0 and tile_rows <= rows

    blocks_real = -(-rows // tile_rows)

    # Leading "parallel" axis: splits rows across the two v7x TensorCores.  On
    # single-core chips (v5e/v6e) we keep one part: the split would just be a
    # serial loop plus a wasted phantom block from rounding.
    if num_parts is None:
        num_parts = 2 if (blocks_real >= 4 and _guess_num_tensorcores() >= 2) else 1
    num_parts = max(1, min(int(num_parts), blocks_real))
    blocks_padded = _round_up(blocks_real, num_parts)
    blocks_per_part = blocks_padded // num_parts

    # Ragged last block and/or phantom blocks are masked in-kernel (no padding).
    needs_mask = (rows % tile_rows != 0) or (blocks_padded != blocks_real)

    last_block = blocks_real - 1
    if blocks_padded != blocks_real:
        def in_map(p, k):
            return (jnp.minimum(p * blocks_per_part + k, last_block), 0)
    else:
        def in_map(p, k):
            return (p * blocks_per_part + k, 0)

    block_bytes = tile_rows * C * itemsize
    # 2 inputs x 2 pipeline buffers x block + (64,C) f32 accumulators/temps,
    # with headroom; stays <= physical VMEM on every generation (incl. v7x).
    vmem_limit = int(min(48 << 20, max(24 << 20, 5 * block_bytes + (8 << 20))))

    kernel = functools.partial(
        _deep_energy_kernel,
        alpha=float(alpha),
        inv_n=1.0 / float(n_total),
        group_rows=group_rows,
        rows_valid=rows,
        needs_mask=needs_mask)

    out = pl.pallas_call(
        kernel,
        out_shape=jax.ShapeDtypeStruct((num_parts, 8, 128), jnp.float32),
        grid_spec=pltpu.PrefetchScalarGridSpec(
            num_scalar_prefetch=0,
            grid=(num_parts, blocks_per_part),
            in_specs=[
                pl.BlockSpec((tile_rows, C), in_map),
                pl.BlockSpec((tile_rows, C), in_map),
            ],
            out_specs=pl.BlockSpec((1, 8, 128), lambda p, k: (p, 0, 0)),
            scratch_shapes=[
                pltpu.VMEM((group_rows, C), jnp.float32),
                pltpu.VMEM((group_rows, C), jnp.float32),
            ],
        ),
        compiler_params=pltpu.CompilerParams(
            dimension_semantics=("parallel", "arbitrary"),
            vmem_limit_bytes=vmem_limit),
    )(pt, pf)

    loss_reg = jnp.sum(out[:, 0, 0])
    loss_div = jnp.sum(out[:, 0, 1])
    if reduction:
        return loss_reg + loss_div
    return loss_reg, loss_div


if __name__ == "__main__":
    key = jax.random.PRNGKey(0)
    k1, k2, k3, k4, k5, k6 = jax.random.split(key, 6)

    # Small energy-model scores: batch=32 samples x 128 "logit" columns.
    pred_true = jax.random.normal(k1, (32, 128), dtype=jnp.float32)
    pred_false = jax.random.normal(k2, (32, 128), dtype=jnp.float32)

    out = deep_energy_loss(pred_true, pred_false, alpha=1.0, reduction=True,
                           force_pallas=True)
    out = jax.block_until_ready(out)
    ref = _reference_jnp(pred_true, pred_false, 1.0, True)
    assert jnp.allclose(out, ref, atol=1e-5, rtol=1e-5), (out, ref)

    # Non-reduced path with a non-default alpha.
    reg, div = deep_energy_loss(pred_true, pred_false, alpha=0.5,
                                reduction=False, force_pallas=True)
    jax.block_until_ready((reg, div))
    ref_reg, ref_div = _reference_jnp(pred_true, pred_false, 0.5, False)
    assert jnp.allclose(reg, ref_reg, atol=1e-5, rtol=1e-5), (reg, ref_reg)
    assert jnp.allclose(div, ref_div, atol=1e-5, rtol=1e-5), (div, ref_div)

    # numel not divisible by 128: exercises the (rare) zero-pad fallback path.
    pt_odd = jax.random.normal(k3, (7, 33), dtype=jnp.float32)
    pf_odd = jax.random.normal(k4, (7, 33), dtype=jnp.float32)
    out_odd = deep_energy_loss(pt_odd, pf_odd, alpha=2.0, reduction=True,
                               force_pallas=True)
    jax.block_until_ready(out_odd)
    ref_odd = _reference_jnp(pt_odd, pf_odd, 2.0, True)
    assert jnp.allclose(out_odd, ref_odd, atol=1e-5, rtol=1e-5), (out_odd, ref_odd)

    # Multi-block grid + explicit 2-part split with a ragged last block and a
    # phantom rounded-up block: exercises in-kernel masking + clamped index map.
    pt_big = jax.random.normal(k5, (300, 512), dtype=jnp.float32)
    pf_big = jax.random.normal(k6, (300, 512), dtype=jnp.float32)
    out_big = deep_energy_loss(pt_big, pf_big, alpha=1.0, reduction=True,
                               force_pallas=True, max_block_rows=128,
                               num_parts=2)
    jax.block_until_ready(out_big)
    ref_big = _reference_jnp(pt_big, pf_big, 1.0, True)
    assert jnp.allclose(out_big, ref_big, atol=1e-5, rtol=1e-5), (out_big, ref_big)

    # bf16 inputs stay bf16 in HBM (half the traffic) and are cast in-kernel;
    # also exercises the in-block fori_loop over 64-row groups.
    pt_bf = jax.random.normal(k5, (256, 512), dtype=jnp.float32).astype(jnp.bfloat16)
    pf_bf = jax.random.normal(k6, (256, 512), dtype=jnp.float32).astype(jnp.bfloat16)
    out_bf = deep_energy_loss(pt_bf, pf_bf, alpha=1.0, reduction=True,
                              force_pallas=True)
    jax.block_until_ready(out_bf)
    ref_bf = _reference_jnp(pt_bf, pf_bf, 1.0, True)
    assert jnp.allclose(out_bf, ref_bf, atol=1e-3, rtol=1e-3), (out_bf, ref_bf)

    # Auto-dispatch: tiny inputs take the plain-jnp fallback path.
    out_auto = deep_energy_loss(pred_true, pred_false)
    jax.block_until_ready(out_auto)
    assert jnp.allclose(out_auto, ref, atol=1e-5, rtol=1e-5), (out_auto, ref)

    print("KERNEL_OK")
</pallas_src>

<mosaic_0001>
module attributes {stable_mosaic.version = 11 : i64} {
  func.func @_deep_energy_kernel(%arg0: i32, %arg1: i32, %arg2: memref<8x512xf32, #tpu.memory_space<vmem>>, %arg3: memref<8x512xf32, #tpu.memory_space<vmem>>, %arg4: memref<1x8x128xf32, #tpu.memory_space<vmem>>, %arg5: memref<8x512xf32, #tpu.memory_space<vmem>>, %arg6: memref<8x512xf32, #tpu.memory_space<vmem>>) attributes {dimension_semantics = [#tpu.dimension_semantics<parallel>, #tpu.dimension_semantics<arbitrary>], iteration_bounds = array<i64: 1, 1>, scalar_prefetch = 0 : i64, scratch_operands = 2 : i64, tpu.core_type = #tpu.core_type<tc>, window_params = [{transform_indices = @transform_0, window_bounds = array<i64: 8, 512>}, {transform_indices = @transform_1, window_bounds = array<i64: 8, 512>}, {transform_indices = @transform_2, window_bounds = array<i64: 1, 8, 128>}]} {
    %c0_i32 = arith.constant 0 : i32
    %0 = arith.cmpi eq, %arg1, %c0_i32 : i32
    %1 = arith.extui %0 : i1 to i32
    %c0_i32_0 = arith.constant 0 : i32
    %2 = arith.cmpi ne, %1, %c0_i32_0 : i32
    scf.if %2 {
      %cst = arith.constant 0.000000e+00 : f32
      %18 = vector.broadcast %cst : f32 to vector<8x512xf32>
      %c0_14 = arith.constant 0 : index
      %c0_15 = arith.constant 0 : index
      %19 = vector.load %arg5[%c0_14, %c0_15] : memref<8x512xf32, #tpu.memory_space<vmem>>, vector<8x512xf32>
      tpu.vector_store %arg5[%c0_14, %c0_15], %18 {strides = array<i32>} : memref<8x512xf32, #tpu.memory_space<vmem>>, vector<8x512xf32>,
      %cst_16 = arith.constant 0.000000e+00 : f32
      %20 = vector.broadcast %cst_16 : f32 to vector<8x512xf32>
      %c0_17 = arith.constant 0 : index
      %c0_18 = arith.constant 0 : index
      %21 = vector.load %arg6[%c0_17, %c0_18] : memref<8x512xf32, #tpu.memory_space<vmem>>, vector<8x512xf32>
      tpu.vector_store %arg6[%c0_17, %c0_18], %20 {strides = array<i32>} : memref<8x512xf32, #tpu.memory_space<vmem>>, vector<8x512xf32>,
    } else {
    }
    %c0 = arith.constant 0 : index
    %c0_1 = arith.constant 0 : index
    %3 = vector.load %arg2[%c0, %c0_1] : memref<8x512xf32, #tpu.memory_space<vmem>>, vector<8x512xf32>
    %c0_2 = arith.constant 0 : index
    %c0_3 = arith.constant 0 : index
    %4 = vector.load %arg3[%c0_2, %c0_3] : memref<8x512xf32, #tpu.memory_space<vmem>>, vector<8x512xf32>
    %c0_4 = arith.constant 0 : index
    %c0_5 = arith.constant 0 : index
    %5 = vector.load %arg5[%c0_4, %c0_5] : memref<8x512xf32, #tpu.memory_space<vmem>>, vector<8x512xf32>
    %6 = arith.mulf %3, %3 : vector<8x512xf32>
    %7 = arith.mulf %4, %4 : vector<8x512xf32>
    %8 = arith.addf %6, %7 : vector<8x512xf32>
    %9 = arith.addf %5, %8 : vector<8x512xf32>
    %c0_6 = arith.constant 0 : index
    %c0_7 = arith.constant 0 : index
    %10 = vector.load %arg5[%c0_6, %c0_7] : memref<8x512xf32, #tpu.memory_space<vmem>>, vector<8x512xf32>
    tpu.vector_store %arg5[%c0_6, %c0_7], %9 {strides = array<i32>} : memref<8x512xf32, #tpu.memory_space<vmem>>, vector<8x512xf32>,
    %c0_8 = arith.constant 0 : index
    %c0_9 = arith.constant 0 : index
    %11 = vector.load %arg6[%c0_8, %c0_9] : memref<8x512xf32, #tpu.memory_space<vmem>>, vector<8x512xf32>
    %12 = arith.subf %4, %3 : vector<8x512xf32>
    %13 = arith.addf %11, %12 : vector<8x512xf32>
    %c0_10 = arith.constant 0 : index
    %c0_11 = arith.constant 0 : index
    %14 = vector.load %arg6[%c0_10, %c0_11] : memref<8x512xf32, #tpu.memory_space<vmem>>, vector<8x512xf32>
    tpu.vector_store %arg6[%c0_10, %c0_11], %13 {strides = array<i32>} : memref<8x512xf32, #tpu.memory_space<vmem>>, vector<8x512xf32>,
    %c0_i32_12 = arith.constant 0 : i32
    %15 = arith.cmpi eq, %arg1, %c0_i32_12 : i32
    %16 = arith.extui %15 : i1 to i32
    %c0_i32_13 = arith.constant 0 : i32
    %17 = arith.cmpi ne, %16, %c0_i32_13 : i32
    scf.if %17 {
      %c0_14 = arith.constant 0 : index
      %c0_15 = arith.constant 0 : index
      %18 = vector.load %arg5[%c0_14, %c0_15] : memref<8x512xf32, #tpu.memory_space<vmem>>, vector<8x512xf32>
      %19 = vector.shape_cast %18 : vector<8x512xf32> to vector<1x8x512xf32>
      %cst = arith.constant dense<0.000000e+00> : vector<1xf32>
      %20 = vector.multi_reduction <add>, %19, %cst [1, 2] : vector<1x8x512xf32> to vector<1xf32>
      %21 = vector.shape_cast %20 : vector<1xf32> to vector<1x1x1xf32>
      %22 = vector.extract %21[0, 0, 0] : f32 from vector<1x1x1xf32>
      %c0_16 = arith.constant 0 : index
      %c0_17 = arith.constant 0 : index
      %23 = vector.load %arg6[%c0_16, %c0_17] : memref<8x512xf32, #tpu.memory_space<vmem>>, vector<8x512xf32>
      %24 = vector.shape_cast %23 : vector<8x512xf32> to vector<1x8x512xf32>
      %cst_18 = arith.constant dense<0.000000e+00> : vector<1xf32>
      %25 = vector.multi_reduction <add>, %24, %cst_18 [1, 2] : vector<1x8x512xf32> to vector<1xf32>
      %26 = vector.shape_cast %25 : vector<1xf32> to vector<1x1x1xf32>
      %27 = vector.extract %26[0, 0, 0] : f32 from vector<1x1x1xf32>
      %cst_19 = arith.constant 2.44140625E-4 : f32
      %28 = arith.mulf %cst_19, %22 : f32
      %cst_20 = arith.constant 2.44140625E-4 : f32
      %29 = arith.mulf %cst_20, %27 : f32
      %30 = tpu.iota {dimensions = array<i32: 2>} : vector<1x8x128xi32>
      %c0_i32_21 = arith.constant 0 : i32
      %31 = vector.broadcast %c0_i32_21 : i32 to vector<1x8x128xi32>
      %32 = arith.cmpi eq, %30, %31 : vector<1x8x128xi32>
      %c1_i32 = arith.constant 1 : i32
      %33 = vector.broadcast %c1_i32 : i32 to vector<1x8x128xi32>
      %34 = arith.cmpi eq, %30, %33 : vector<1x8x128xi32>
      %cst_22 = arith.constant 0.000000e+00 : f32
      %35 = vector.broadcast %29 : f32 to vector<1x8x128xf32>
      %36 = vector.broadcast %cst_22 : f32 to vector<1x8x128xf32>
      %37 = arith.select %34, %35, %36 : vector<1x8x128xi1>, vector<1x8x128xf32>
      %38 = vector.broadcast %28 : f32 to vector<1x8x128xf32>
      %39 = arith.select %32, %38, %37 : vector<1x8x128xi1>, vector<1x8x128xf32>
      %c0_23 = arith.constant 0 : index
      %c0_24 = arith.constant 0 : index
      %c0_25 = arith.constant 0 : index
      %40 = vector.load %arg4[%c0_23, %c0_24, %c0_25] : memref<1x8x128xf32, #tpu.memory_space<vmem>>, vector<1x8x128xf32>
      tpu.vector_store %arg4[%c0_23, %c0_24, %c0_25], %39 {strides = array<i32>} : memref<1x8x128xf32, #tpu.memory_space<vmem>>, vector<1x8x128xf32>,
    } else {
    }
    return
  }
  func.func @transform_0(%arg0: i32, %arg1: i32) -> (i32, i32) {
    %c1_i32 = arith.constant 1 : i32
    %0 = arith.muli %arg0, %c1_i32 : i32
    %1 = arith.addi %0, %arg1 : i32
    %c0_i32 = arith.constant 0 : i32
    %c0_i32_0 = arith.constant 0 : i32
    return %1, %c0_i32 : i32, i32
  }
  func.func @transform_1(%arg0: i32, %arg1: i32) -> (i32, i32) {
    %c1_i32 = arith.constant 1 : i32
    %0 = arith.muli %arg0, %c1_i32 : i32
    %1 = arith.addi %0, %arg1 : i32
    %c0_i32 = arith.constant 0 : i32
    %c0_i32_0 = arith.constant 0 : i32
    return %1, %c0_i32 : i32, i32
  }
  func.func @transform_2(%arg0: i32, %arg1: i32) -> (i32, i32, i32) {
    %c0_i32 = arith.constant 0 : i32
    %c0_i32_0 = arith.constant 0 : i32
    %c0_i32_1 = arith.constant 0 : i32
    return %arg0, %c0_i32, %c0_i32_0 : i32, i32, i32
  }
}

</mosaic_0001>

<bundles_post_ra>
// kernel: tpu_custom_call.1
= control target key start
LH: loop header
LB: loop body
LE: loop exit
PB: predicated region body
PF: predicated region fallthrough
CT: control target
= control target key end

     0   :  { %7 = vsyncpa [#allocation5], 0  ;;  %s301_s0 = inlined_call_operand.hbm [shape: f32[8,512], index: 0, kind: input, shape index: {}]   ;;  %s302_s1 = inlined_call_operand.hbm [shape: f32[8,512], index: 1, kind: input, shape index: {}]   ;;  %s303_s2 = inlined_call_operand.hbm [shape: f32[1,8,128], index: 2, kind: output, shape index: {}]  }
   0x1   :  { %8 = vsyncpa [#allocation8], 0 }
   0x2   :  { %9 = vsyncpa [#allocation6], 0  ;;  %s247_s9 = smov [#allocation4]   ;;  %s248_s11 = smov [#allocation7]  }
   0x3   :  { %s20_s10 = sshll.u32 %s247_s9, 4  ;;  %s34_s12 = sshll.u32 %s248_s11, 4  ;;  %s21_s10 = int_to_ptr.vmem [resolvable:$true] %s20_s10  ;;  %s35_s12 = int_to_ptr.vmem [resolvable:$true] %s34_s12 }
   0x4   :  { %s175_s15 = scalar_lea.hbm %s301_s0, 512 }
   0x5   :  { %p176_p0 = scmp.ne.s32.totalorder %s301_s0, %s175_s15  ;;  %p179_p1 = scmp.lt.u32.totalorder %s175_s15, %s301_s0 }
   0x7   :  { %p181_p2 = pnand %p179_p1, %p176_p0 }
   0x9   :  { %184 = shalt.err (!%p181_p2)
}
   0xa   :  { %s185_s20 = scalar_lea.vmem %s21_s10, 512  ;;  %p190_p4 = scmp.lt.s32.totalorder %s21_s10, %s21_s10 }
   0xb   :  { %p186_p3 = scmp.ne.s32.totalorder %s21_s10, %s185_s20  ;;  %p191_p5 = scmp.lt.s32.totalorder %s185_s20, %s185_s20 }
   0xd   :  { %p192_p6 = por %p191_p5, %p190_p4 }
   0xf   :  { %p193_p7 = pnand %p192_p6, %p186_p3 }
  0x11   :  { %196 = shalt.err (!%p193_p7)
}
  0x12   :  { %23 = dma.hbm_to_vmem [thread:$0]  %s301_s0, 512, %s21_s10, [#allocation5]  }
  0x13   :  { %s197_s25 = scalar_lea.hbm %s302_s1, 512 }
  0x14   :  { %p198_p8 = scmp.ne.s32.totalorder %s302_s1, %s197_s25  ;;  %p201_p9 = scmp.lt.u32.totalorder %s197_s25, %s302_s1 }
  0x16   :  { %p203_p10 = pnand %p201_p9, %p198_p8 }
  0x18   :  { %206 = shalt.err (!%p203_p10)
}
  0x19   :  { %s207_s30 = scalar_lea.vmem %s35_s12, 512  ;;  %p212_p12 = scmp.lt.s32.totalorder %s35_s12, %s35_s12 }
  0x1a   :  { %p208_p11 = scmp.ne.s32.totalorder %s35_s12, %s207_s30  ;;  %p213_p13 = scmp.lt.s32.totalorder %s207_s30, %s207_s30 }
  0x1c   :  { %p214_p0 = por %p213_p13, %p212_p12 }
  0x1e   :  { %p215_p1 = pnand %p214_p0, %p208_p11 }
  0x20   :  { %218 = shalt.err (!%p215_p1)
}
  0x21   :  { %37 = dma.hbm_to_vmem [thread:$0]  %s302_s1, 512, %s35_s12, [#allocation8]  }
  0x22   :  { %241 = dma.done.wait [#allocation5], 512  }
  0x23   :  { %242 = vsyncadd [#allocation5], 4294966784 }
  0x24   :  { %243 = dma.done.wait [#allocation8], 512  }
  0x25   :  { %244 = vsyncadd [#allocation8], 4294966784  ;;  %v58_v0 = vld [vmem:[#allocation4] sm:$0xff]  ;;  %v59_v1 = vld [vmem:[#allocation4 + $0x8] sm:$0xff]  ;;  %v143_v44 = vlaneseq  ;;  %s249_s7 = smov [#allocation9]  }
  0x26   :  { %v60_v2 = vld [vmem:[#allocation4 + $0x10] sm:$0xff]  ;;  %v61_v3 = vld [vmem:[#allocation4 + $0x18] sm:$0xff]  ;;  %v62_v4 = vld [vmem:[#allocation7] sm:$0xff]  ;;  %v70_v6 = vmul.f32 %v58_v0, %v58_v0  ;;  %v71_v7 = vmul.f32 %v59_v1, %v59_v1  ;;  %s158_s8 = sshll.u32 %s249_s7, 4  ;;  %s159_s8 = int_to_ptr.vmem [resolvable:$true] %s158_s8 }
  0x27   :  { %v63_v5 = vld [vmem:[#allocation7 + $0x8] sm:$0xff]  ;;  %v72_v8 = vmul.f32 %v60_v2, %v60_v2  ;;  %v64_v9 = vld [vmem:[#allocation7 + $0x10] sm:$0xff]  ;;  %v65_v10 = vld [vmem:[#allocation7 + $0x18] sm:$0xff]  ;;  %v73_v11 = vmul.f32 %v61_v3, %v61_v3  ;;  %v74_v12 = vmul.f32 %v62_v4, %v62_v4  ;;  %v94_v14 = vsub.f32 %v62_v4, %v58_v0  ;;  %s219_s9 = scalar_lea.vmem %s159_s8, 128  ;;  %p224_p3 = scmp.lt.s32.totalorder %s159_s8, %s159_s8 }
  0x28   :  { %v75_v13 = vmul.f32 %v63_v5, %v63_v5  ;;  %v76_v15 = vmul.f32 %v64_v9, %v64_v9  ;;  %v77_v16 = vmul.f32 %v65_v10, %v65_v10  ;;  %v95_v17 = vsub.f32 %v63_v5, %v59_v1  ;;  %p220_p2 = scmp.ne.s32.totalorder %s159_s8, %s219_s9  ;;  %p225_p4 = scmp.lt.s32.totalorder %s219_s9, %s219_s9 }
  0x29   :  { %v78_v18 = vadd.f32 %v74_v12, %v70_v6  ;;  %v96_v20 = vsub.f32 %v64_v9, %v60_v2  ;;  %v97_v26 = vsub.f32 %v65_v10, %v61_v3  ;;  %v144_v45 = vand.u32 127, %v143_v44 }
  0x2a   :  { %v79_v19 = vadd.f32 %v75_v13, %v71_v7  ;;  %v80_v21 = vadd.f32 %v76_v15, %v72_v8  ;;  %v129_v22 = vadd.f32 %v95_v17, %v94_v14  ;;  %v81_v23 = vadd.f32 %v77_v16, %v73_v11  ;;  %p226_p5 = por %p225_p4, %p224_p3 }
  0x2b   :  { %vm146_vm0 = vcmp.eq.s32.totalorder %v144_v45, 1  ;;  %vm145_vm1 = vcmp.eq.s32.totalorder %v144_v45, 0 }
  0x2c   :  { %v113_v24 = vadd.f32 %v79_v19, %v78_v18  ;;  %v130_v27 = vadd.f32 %v129_v22, %v96_v20  ;;  %p227_p6 = pnand %p226_p5, %p220_p2 }
  0x2e   :  { %v114_v25 = vadd.f32 %v113_v24, %v80_v21  ;;  %v131_v29 = vadd.f32 %v130_v27, %v97_v26 }
  0x30   :  { %v115_v28 = vadd.f32 %v114_v25, %v81_v23 }
  0x32   :  { %116 = vadd.xlane.f32.xlu0 %v115_v28 }
  0x36   :  { %132 = vadd.xlane.f32.xlu0 %v131_v29 }
  0xbf   :  { %v117_v30 = vpop.xlane.xlu0 %116 }
  0xc0   :  { %v118_v31 = vrot.slane %v117_v30, 4 }
  0xc2   :  { %v119_v32 = vadd.f32 %v118_v31, %v117_v30 }
  0xc3   :  { %v133_v33 = vpop.xlane.xlu0 %132 }
  0xc4   :  { %v120_v34 = vrot.slane %v119_v32, 2  ;;  %v134_v35 = vrot.slane %v133_v33, 4 }
  0xc6   :  { %v135_v36 = vadd.f32 %v134_v35, %v133_v33  ;;  %v121_v37 = vadd.f32 %v120_v34, %v119_v32 }
  0xc8   :  { %v136_v38 = vrot.slane %v135_v36, 2  ;;  %v122_v39 = vrot.slane %v121_v37, 1 }
  0xca   :  { %v137_v40 = vadd.f32 %v136_v38, %v135_v36  ;;  %v123_v41 = vadd.f32 %v122_v39, %v121_v37 }
  0xcc   :  { %168 = vpush %v123_v41  ;;  %v138_v42 = vrot.slane %v137_v40, 1 }
  0xce   :  { %v139_v43 = vadd.f32 %v138_v42, %v137_v40 }
  0xd0   :  { %170 = vpush %v139_v43 }
  0xfd   :  { %s169_s1 = spop %168 }
  0xfe   :  { %s141_s4 = smul.f32 0.00024414063, %s169_s1 }
 0x100   :  { %v149_v47 = vstv %s141_s4 }
 0x101   :  { %s171_s5 = spop %170 }
 0x102   :  { %s142_s6 = smul.f32 0.00024414063, %s171_s5 }
 0x104   :  { %v147_v46 = vstv %s142_s6 }
 0x105   :  { %v148_v48 = vsel %vm146_vm0, %v147_v46, 0.0 }
 0x106   :  { %v150_v49 = vsel %vm145_vm1, %v149_v47, %v148_v48 }
 0x107   :  { %151 = vst [vmem:[#allocation9] sm:$0xff] %v150_v49 }
 0x108   :  { %230 = shalt.err (!%p227_p6)
}
 0x109   :  { %s231_s12 = scalar_lea.hbm %s303_s2, 128 }
 0x10a   :  { %p232_p7 = scmp.ne.s32.totalorder %s303_s2, %s231_s12  ;;  %p235_p8 = scmp.lt.u32.totalorder %s231_s12, %s303_s2 }
 0x10c   :  { %p237_p9 = pnand %p235_p8, %p232_p7 }
 0x10e   :  { %240 = shalt.err (!%p237_p9)
}
 0x10f   :  { %161 = dma.vmem_to_hbm [thread:$0]  %s159_s8, 128, %s303_s2, [#allocation6]  }
 0x110   :  { %245 = dma.done.wait [#allocation6], 128  }
 0x111   :  { %246 = vsyncadd [#allocation6], 4294967168 }
 0x112   :  { %165 = vsyncpa [#allocation5], 1 }
 0x113   :  { %166 = vsyncpa [#allocation8], 1 }
 0x114   :  { %167 = vsyncpa [#allocation6], 1 }

</bundles_post_ra>
